<compile_context>
chip_gen: v7x
topology: tpu7x:2x2x1
jax: 0.10.0
libtpu: 0.0.40
codegen_flags: <defaults>
</compile_context>

<pallas_src>
import jax
import jax.numpy as jnp
from jax.experimental import pallas as pl
from jax.experimental.pallas import tpu as pltpu


def _sigmoid_mul_kernel(x_ref, g_ref, o_ref):
    # x_ref: (TR, HW)  activation tile
    # g_ref: (TR, 1)   per-row gate logits (pre-sigmoid)
    # o_ref: (TR, HW)  output tile = x * sigmoid(gate), broadcast over lanes
    gate = jax.nn.sigmoid(g_ref[...].astype(jnp.float32))
    o_ref[...] = (x_ref[...].astype(jnp.float32) * gate).astype(o_ref.dtype)


def sigmoid_mul(
    x_nchw: jax.Array,
    gate_nc11: jax.Array,
    *,
    block_rows: int | None = None,
    target_block_bytes: int = 2 * 1024 * 1024,
) -> jax.Array:
    """x216 = x210 * sigmoid(x214), matching the PyTorch module semantics.

    x_nchw:    (N, C, H, W)
    gate_nc11: (N, C, 1, 1)
    returns    (N, C, H, W), same dtype as x_nchw.
    """
    N, C, H, W = x_nchw.shape
    assert gate_nc11.shape == (N, C, 1, 1)
    NC, HW = N * C, H * W

    x2d = x_nchw.reshape(NC, HW)          # no-copy reshape (row = one channel plane)
    g2d = gate_nc11.reshape(NC, 1)

    itemsize = jnp.dtype(x_nchw.dtype).itemsize

    # --- choose the row-tile size --------------------------------------------
    if block_rows is None:
        tr = target_block_bytes // (HW * itemsize)   # ~2 MiB per x tile
    else:
        tr = block_rows
    if tr >= NC:
        tr = NC                                      # full extent: always legal
    else:
        tr = max(8, (tr // 8) * 8)                   # (8, 128) sublane rule
        if tr >= NC:
            tr = NC

    grid = (pl.cdiv(NC, tr),)                        # ragged last block is OK

    out2d = pl.pallas_call(
        _sigmoid_mul_kernel,
        out_shape=jax.ShapeDtypeStruct((NC, HW), x_nchw.dtype),
        grid=grid,
        in_specs=[
            pl.BlockSpec((tr, HW), lambda i: (i, 0)),   # x tile
            pl.BlockSpec((tr, 1), lambda i: (i, 0)),    # gate tile
        ],
        out_specs=pl.BlockSpec((tr, HW), lambda i: (i, 0)),
        compiler_params=pltpu.CompilerParams(
            # Independent row blocks: shard across both TensorCores on v7x,
            # harmless no-op on v5e/v6e.
            dimension_semantics=("parallel",),
            # Headroom over the v5e 16 MiB default; well under v7x's 64 MiB.
            vmem_limit_bytes=32 * 1024 * 1024,
        ),
    )(x2d, g2d)

    return out2d.reshape(N, C, H, W)


if __name__ == "__main__":
    # Small SE-style shapes consistent with the module's (N,C,H,W)+(N,C,1,1) contract.
    N, C, H, W = 2, 64, 14, 14
    key = jax.random.PRNGKey(0)
    kx, kg = jax.random.split(key)
    x210 = jax.random.normal(kx, (N, C, H, W), dtype=jnp.float32)
    x214 = jax.random.normal(kg, (N, C, 1, 1), dtype=jnp.float32)

    # Plain-JAX reference.
    ref = x210 * jax.nn.sigmoid(x214)

    # 1) auto tile size (single block at this tiny size, multi-block at prod sizes).
    out = jax.block_until_ready(sigmoid_mul(x210, x214))
    assert out.shape == (N, C, H, W) and out.dtype == x210.dtype
    assert jnp.allclose(out, ref, atol=1e-6, rtol=1e-6), "mismatch vs reference (auto tile)"

    # 2) forced small tile -> multi-step, double-buffered grid (evenly divisible).
    out2 = jax.block_until_ready(sigmoid_mul(x210, x214, block_rows=32))
    assert jnp.allclose(out2, ref, atol=1e-6, rtol=1e-6), "mismatch vs reference (tr=32)"

    # 3) ragged last block (cdiv grid, masked writeback on the edge block).
    out3 = jax.block_until_ready(sigmoid_mul(x210, x214, block_rows=40))
    assert jnp.allclose(out3, ref, atol=1e-6, rtol=1e-6), "mismatch vs reference (tr=40)"

    print("KERNEL_OK")
</pallas_src>

<mosaic_0001>
module attributes {stable_mosaic.version = 11 : i64} {
  func.func @_sigmoid_mul_kernel(%arg0: i32, %arg1: memref<128x196xf32, #tpu.memory_space<vmem>>, %arg2: memref<128x1xf32, #tpu.memory_space<vmem>>, %arg3: memref<128x196xf32, #tpu.memory_space<vmem>>) attributes {dimension_semantics = [#tpu.dimension_semantics<parallel>], iteration_bounds = array<i64: 1>, scalar_prefetch = 0 : i64, scratch_operands = 0 : i64, tpu.core_type = #tpu.core_type<tc>, window_params = [{transform_indices = @transform_0, window_bounds = array<i64: 128, 196>}, {transform_indices = @transform_1, window_bounds = array<i64: 128, 1>}, {transform_indices = @transform_2, window_bounds = array<i64: 128, 196>}]} {
    %c0 = arith.constant 0 : index
    %c0_0 = arith.constant 0 : index
    %0 = vector.load %arg2[%c0, %c0_0] : memref<128x1xf32, #tpu.memory_space<vmem>>, vector<128x1xf32>
    %1 = arith.negf %0 : vector<128x1xf32>
    %2 = math.exp %1 : vector<128x1xf32>
    %cst = arith.constant 1.000000e+00 : f32
    %3 = vector.broadcast %cst : f32 to vector<128x1xf32>
    %4 = arith.addf %3, %2 : vector<128x1xf32>
    %5 = arith.divf %3, %4 : vector<128x1xf32>
    %c0_1 = arith.constant 0 : index
    %c0_2 = arith.constant 0 : index
    %6 = vector.load %arg1[%c0_1, %c0_2] : memref<128x196xf32, #tpu.memory_space<vmem>>, vector<128x196xf32>
    %7 = vector.broadcast %5 : vector<128x1xf32> to vector<128x196xf32>
    %8 = arith.mulf %6, %7 : vector<128x196xf32>
    %c0_3 = arith.constant 0 : index
    %c0_4 = arith.constant 0 : index
    %9 = vector.load %arg3[%c0_3, %c0_4] : memref<128x196xf32, #tpu.memory_space<vmem>>, vector<128x196xf32>
    tpu.vector_store %arg3[%c0_3, %c0_4], %8 {strides = array<i32>} : memref<128x196xf32, #tpu.memory_space<vmem>>, vector<128x196xf32>,
    return
  }
  func.func @transform_0(%arg0: i32) -> (i32, i32) {
    %c0_i32 = arith.constant 0 : i32
    %c0_i32_0 = arith.constant 0 : i32
    return %arg0, %c0_i32 : i32, i32
  }
  func.func @transform_1(%arg0: i32) -> (i32, i32) {
    %c0_i32 = arith.constant 0 : i32
    %c0_i32_0 = arith.constant 0 : i32
    return %arg0, %c0_i32 : i32, i32
  }
  func.func @transform_2(%arg0: i32) -> (i32, i32) {
    %c0_i32 = arith.constant 0 : i32
    %c0_i32_0 = arith.constant 0 : i32
    return %arg0, %c0_i32 : i32, i32
  }
}

</mosaic_0001>

<bundles_post_ra>
// kernel: tpu_custom_call.1
= control target key start
LH: loop header
LB: loop body
LE: loop exit
PB: predicated region body
PF: predicated region fallthrough
CT: control target
= control target key end

     0   :  { %v387_v0 = vmov 0   ;;  %vm268_vm0 = vcmask 556032   ;;  %s659_s1 = inlined_call_operand.vmem [shape: f32[128,1], index: 1, kind: input, shape index: {}]   ;;  %s660_s0 = inlined_call_operand.vmem [shape: f32[128,196], index: 0, kind: input, shape index: {}]   ;;  %s661_s2 = inlined_call_operand.vmem [shape: f32[128,196], index: 2, kind: output, shape index: {}]  }
   0x1   :  { %322 = vset.pattern.permute.xlu1 %v387_v0  ;;  %321 = vset.pattern.permute.xlu0 %v387_v0  ;;  %v13_v1 = vld [vmem:[%s659_s1 + $0x10] sm:$0xff]  ;;  %v11_v2 = vld [vmem:[%s659_s1] sm:$0xff]  ;;  %v14_v3 = vld [vmem:[%s659_s1 + $0x18] sm:$0xff] }
   0x2   :  { %v306_v4 = vmul.f32 -1.442695, %v13_v1  ;;  %v304_v5 = vmul.f32 -1.442695, %v11_v2  ;;  %v307_v6 = vmul.f32 -1.442695, %v14_v3 }
   0x3   :  { %v12_v7 = vld [vmem:[%s659_s1 + $0x8] sm:$0xff]  ;;  %v15_v9 = vld [vmem:[%s659_s1 + $0x20] sm:$0xff]  ;;  %v18_v13 = vld [vmem:[%s659_s1 + $0x38] sm:$0xff] }
   0x4   :  { %v16_v8 = vld [vmem:[%s659_s1 + $0x28] sm:$0xff]  ;;  %323 = vpow2.f32 %v306_v4  ;;  %v305_v10 = vmul.f32 -1.442695, %v12_v7  ;;  %v308_v12 = vmul.f32 -1.442695, %v15_v9  ;;  %v17_v14 = vld [vmem:[%s659_s1 + $0x30] sm:$0xff] }
   0x5   :  { %v309_v11 = vmul.f32 -1.442695, %v16_v8  ;;  %325 = vpow2.f32 %v304_v5  ;;  %v20_v15 = vld [vmem:[%s659_s1 + $0x48] sm:$0xff]  ;;  %v311_v16 = vmul.f32 -1.442695, %v18_v13  ;;  %v19_v18 = vld [vmem:[%s659_s1 + $0x40] sm:$0xff] }
   0x6   :  { %327 = vpow2.f32 %v307_v6  ;;  %v310_v17 = vmul.f32 -1.442695, %v17_v14  ;;  %v313_v19 = vmul.f32 -1.442695, %v20_v15  ;;  %v22_v20 = vld [vmem:[%s659_s1 + $0x58] sm:$0xff]  ;;  %v21_v22 = vld [vmem:[%s659_s1 + $0x50] sm:$0xff] }
   0x7   :  { %329 = vpow2.f32 %v305_v10  ;;  %v312_v21 = vmul.f32 -1.442695, %v19_v18  ;;  %v315_v23 = vmul.f32 -1.442695, %v22_v20  ;;  %v314_v24 = vmul.f32 -1.442695, %v21_v22 }
   0x8   :  { %331 = vpow2.f32 %v309_v11  ;;  %v24_v28 = vld [vmem:[%s659_s1 + $0x68] sm:$0xff]  ;;  %v23_v45 = vld [vmem:[%s659_s1 + $0x60] sm:$0xff]  ;;  %v26_v47 = vld [vmem:[%s659_s1 + $0x78] sm:$0xff] }
   0x9   :  { %333 = vpow2.f32 %v308_v12  ;;  %v317_v35 = vmul.f32 -1.442695, %v24_v28  ;;  %v25_v50 = vld [vmem:[%s659_s1 + $0x70] sm:$0xff]  ;;  %v316_v52 = vmul.f32 -1.442695, %v23_v45  ;;  %v128_v18 = vld [vmem:[%s660_s0 + $0x28] sm:$0xff] }
   0xa   :  { %335 = vpow2.f32 %v311_v16  ;;  %v319_v54 = vmul.f32 -1.442695, %v26_v47  ;;  %v318_v56 = vmul.f32 -1.442695, %v25_v50  ;;  %v124_v20 = vld [vmem:[%s660_s0 + $0x8] sm:$0xff]  ;;  %v130_v28 = vld [vmem:[%s660_s0 + $0x38] sm:$0xff] }
   0xb   :  { %337 = vpow2.f32 %v310_v17  ;;  %v127_v17 = vld [vmem:[%s660_s0 + $0x20] sm:$0xff]  ;;  %v137_v47 = vld [vmem:[%s660_s0 + $0x70] sm:$0xff]  ;;  %v136_v50 = vld [vmem:[%s660_s0 + $0x68] sm:$0xff] }
   0xc   :  { %339 = vpow2.f32 %v313_v19  ;;  %v123_v19 = vld [vmem:[%s660_s0] sm:$0xff] }
   0xd   :  { %341 = vpow2.f32 %v312_v21 }
   0xe   :  { %v324_v25 = vpop.eup %323  ;;  %343 = vpow2.f32 %v315_v23 }
   0xf   :  { %v326_v26 = vpop.eup %325  ;;  %v77_v27 = vadd.f32 1.0, %v324_v25  ;;  %345 = vpow2.f32 %v314_v24 }
  0x10   :  { %v328_v29 = vpop.eup %327  ;;  %v75_v30 = vadd.f32 1.0, %v326_v26 }
  0x11   :  { %v330_v31 = vpop.eup %329  ;;  %347 = vrcp.f32 %v77_v27  ;;  %v78_v32 = vadd.f32 1.0, %v328_v29  ;;  %v129_v27 = vld [vmem:[%s660_s0 + $0x30] sm:$0xff] }
  0x12   :  { %v332_v33 = vpop.eup %331  ;;  %349 = vrcp.f32 %v75_v30  ;;  %v76_v34 = vadd.f32 1.0, %v330_v31  ;;  %v125_v29 = vld [vmem:[%s660_s0 + $0x10] sm:$0xff]  ;;  %v126_v30 = vld [vmem:[%s660_s0 + $0x18] sm:$0xff] }
  0x13   :  { %v334_v36 = vpop.eup %333  ;;  %351 = vrcp.f32 %v78_v32  ;;  %v80_v37 = vadd.f32 1.0, %v332_v33 }
  0x14   :  { %v336_v38 = vpop.eup %335  ;;  %353 = vrcp.f32 %v76_v34  ;;  %v79_v39 = vadd.f32 1.0, %v334_v36 }
  0x15   :  { %v338_v40 = vpop.eup %337  ;;  %v82_v42 = vadd.f32 1.0, %v336_v38  ;;  %355 = vpow2.f32 %v317_v35  ;;  %v134_v38 = vld [vmem:[%s660_s0 + $0x58] sm:$0xff] }
  0x16   :  { %v340_v41 = vpop.eup %339  ;;  %357 = vrcp.f32 %v80_v37  ;;  %v81_v44 = vadd.f32 1.0, %v338_v40  ;;  %v133_v37 = vld [vmem:[%s660_s0 + $0x50] sm:$0xff]  ;;  %v132_v40 = vld [vmem:[%s660_s0 + $0x48] sm:$0xff] }
  0x17   :  { %v342_v43 = vpop.eup %341  ;;  %359 = vrcp.f32 %v79_v39  ;;  %v84_v46 = vadd.f32 1.0, %v340_v41  ;;  %v131_v39 = vld [vmem:[%s660_s0 + $0x40] sm:$0xff] }
  0x18   :  { %v344_v48 = vpop.eup %343  ;;  %v83_v49 = vadd.f32 1.0, %v342_v43  ;;  %361 = vrcp.f32 %v82_v42 }
  0x19   :  { %v346_v51 = vpop.eup %345  ;;  %363 = vrcp.f32 %v81_v44  ;;  %v86_v59 = vadd.f32 1.0, %v344_v48  ;;  %v138_v48 = vld [vmem:[%s660_s0 + $0x78] sm:$0xff] }
  0x1a   :  { %365 = vrcp.f32 %v84_v46  ;;  %v85_v61 = vadd.f32 1.0, %v346_v51 }
  0x1b   :  { %v348_v53 = vpop.eup %347  ;;  %367 = vrcp.f32 %v83_v49  ;;  %v135_v49 = vld [vmem:[%s660_s0 + $0x60] sm:$0xff] }
  0x1c   :  { %v350_v55 = vpop.eup %349  ;;  %167 = vperm.xlu1 %322, %v348_v53   ;;  %369 = vpow2.f32 %v316_v52 }
  0x1d   :  { %v352_v57 = vpop.eup %351  ;;  %157 = vperm.xlu0 %321, %v350_v55   ;;  %371 = vpow2.f32 %v319_v54 }
  0x1e   :  { %v354_v58 = vpop.eup %353  ;;  %373 = vpow2.f32 %v318_v56 }
  0x1f   :  { %v356_v60 = vpop.eup %355  ;;  %375 = vrcp.f32 %v86_v59  ;;  %v139_v59 = vld [vmem:[%s660_s0 + $0x80] sm:$0xff] }
  0x20   :  { %172 = vperm.xlu1 %322, %v352_v57   ;;  %v358_v62 = vpop.eup %357  ;;  %v88_v0 = vadd.f32 1.0, %v356_v60  ;;  %377 = vrcp.f32 %v85_v61  ;;  %v141_v57 = vld [vmem:[%s660_s0 + $0x90] sm:$0xff]  ;;  %v140_v60 = vld [vmem:[%s660_s0 + $0x88] sm:$0xff] }
  0x21   :  { %162 = vperm.xlu0 %321, %v354_v58   ;;  %v360_v63 = vpop.eup %359  ;;  %v142_v58 = vld [vmem:[%s660_s0 + $0x98] sm:$0xff] }
  0x22   :  { %v362_v1 = vpop.eup %361  ;;  %379 = vrcp.f32 %v88_v0 }
  0x23   :  { %v364_v2 = vpop.eup %363 }
  0x24   :  { %182 = vperm.xlu1 %322, %v358_v62   ;;  %v366_v3 = vpop.eup %365 }
  0x25   :  { %177 = vperm.xlu0 %321, %v360_v63   ;;  %v368_v4 = vpop.eup %367 }
  0x26   :  { %v370_v5 = vpop.eup %369 }
  0x27   :  { %v372_v6 = vpop.eup %371  ;;  %v87_v7 = vadd.f32 1.0, %v370_v5  ;;  %v143_v5 = vld [vmem:[%s660_s0 + $0xa0] sm:$0xff] }
  0x28   :  { %192 = vperm.xlu1 %322, %v362_v1   ;;  %v374_v8 = vpop.eup %373  ;;  %v90_v9 = vadd.f32 1.0, %v372_v6  ;;  %v144_v6 = vld [vmem:[%s660_s0 + $0xa8] sm:$0xff] }
  0x29   :  { %187 = vperm.xlu0 %321, %v364_v2   ;;  %381 = vrcp.f32 %v87_v7  ;;  %v89_v10 = vadd.f32 1.0, %v374_v8  ;;  %v376_v11 = vpop.eup %375 }
  0x2a   :  { %383 = vrcp.f32 %v90_v9  ;;  %v378_v12 = vpop.eup %377 }
  0x2b   :  { %385 = vrcp.f32 %v89_v10 }
  0x2c   :  { %202 = vperm.xlu1 %322, %v366_v3   ;;  %v380_v13 = vpop.eup %379  ;;  %v145_v3 = vld [vmem:[%s660_s0 + $0xb0] sm:$0xff] }
  0x2d   :  { %197 = vperm.xlu0 %321, %v368_v4   ;;  %v146_v4 = vld [vmem:[%s660_s0 + $0xb8] sm:$0xff] }
  0x30   :  { %212 = vperm.xlu1 %322, %v376_v11  }
  0x31   :  { %207 = vperm.xlu0 %321, %v378_v12  }
  0x33   :  { %v382_v14 = vpop.eup %381 }
  0x34   :  { %222 = vperm.xlu1 %322, %v380_v13   ;;  %v384_v15 = vpop.eup %383  ;;  %v149_v13 = vld [vmem:[%s660_s0 + $0xd0] sm:$0xff] }
  0x35   :  { %217 = vperm.xlu0 %321, %v382_v14   ;;  %v386_v16 = vpop.eup %385  ;;  %v150_v14 = vld [vmem:[%s660_s0 + $0xd8] sm:$0xff] }
  0x38   :  { %232 = vperm.xlu1 %322, %v384_v15  }
  0x39   :  { %227 = vperm.xlu0 %321, %v386_v16   ;;  %v147_v16 = vld [vmem:[%s660_s0 + $0xc0] sm:$0xff] }
  0x9b   :  { %v168_v21 = vpop.permute.xlu1 %167 }
  0x9c   :  { %v239_v22 = vmul.f32 %v168_v21, %v127_v17  ;;  %v240_v23 = vmul.f32 %v168_v21, %v128_v18  ;;  %v158_v24 = vpop.permute.xlu0 %157  ;;  %v148_v17 = vld [vmem:[%s660_s0 + $0xc8] sm:$0xff]  ;;  %v153_v21 = vld [vmem:[%s660_s0 + $0xf0] sm:$0xff] }
  0x9d   :  { %v235_v25 = vmul.f32 %v158_v24, %v123_v19  ;;  %v236_v26 = vmul.f32 %v158_v24, %v124_v20 }
  0x9e   :  { %272 = vst [vmem:[%s661_s2 + $0x20] sm:$0xff] %v239_v22  ;;  %273 = vst.msk [vmem:[%s661_s2 + $0x28] sm:$0xff] %vm268_vm0, %v240_v23  ;;  %v154_v22 = vld [vmem:[%s660_s0 + $0xf8] sm:$0xff] }
  0x9f   :  { %267 = vst [vmem:[%s661_s2] sm:$0xff] %v235_v25  ;;  %269 = vst.msk [vmem:[%s661_s2 + $0x8] sm:$0xff] %vm268_vm0, %v236_v26  ;;  %v173_v31 = vpop.permute.xlu1 %172  ;;  %v151_v26 = vld [vmem:[%s660_s0 + $0xe0] sm:$0xff] }
  0xa0   :  { %v241_v32 = vmul.f32 %v173_v31, %v129_v27  ;;  %v242_v33 = vmul.f32 %v173_v31, %v130_v28  ;;  %v163_v34 = vpop.permute.xlu0 %162  ;;  %v152_v27 = vld [vmem:[%s660_s0 + $0xe8] sm:$0xff] }
  0xa1   :  { %v237_v35 = vmul.f32 %v163_v34, %v125_v29  ;;  %v238_v36 = vmul.f32 %v163_v34, %v126_v30 }
  0xa2   :  { %274 = vst [vmem:[%s661_s2 + $0x30] sm:$0xff] %v241_v32  ;;  %275 = vst.msk [vmem:[%s661_s2 + $0x38] sm:$0xff] %vm268_vm0, %v242_v33 }
  0xa3   :  { %270 = vst [vmem:[%s661_s2 + $0x10] sm:$0xff] %v237_v35  ;;  %271 = vst.msk [vmem:[%s661_s2 + $0x18] sm:$0xff] %vm268_vm0, %v238_v36  ;;  %v183_v41 = vpop.permute.xlu1 %182 }
  0xa4   :  { %v245_v42 = vmul.f32 %v183_v41, %v133_v37  ;;  %v246_v43 = vmul.f32 %v183_v41, %v134_v38  ;;  %v178_v44 = vpop.permute.xlu0 %177 }
  0xa5   :  { %v243_v45 = vmul.f32 %v178_v44, %v131_v39  ;;  %v244_v46 = vmul.f32 %v178_v44, %v132_v40 }
  0xa6   :  { %278 = vst [vmem:[%s661_s2 + $0x50] sm:$0xff] %v245_v42  ;;  %279 = vst.msk [vmem:[%s661_s2 + $0x58] sm:$0xff] %vm268_vm0, %v246_v43 }
  0xa7   :  { %276 = vst [vmem:[%s661_s2 + $0x40] sm:$0xff] %v243_v45  ;;  %277 = vst.msk [vmem:[%s661_s2 + $0x48] sm:$0xff] %vm268_vm0, %v244_v46  ;;  %v193_v51 = vpop.permute.xlu1 %192 }
  0xa8   :  { %v249_v52 = vmul.f32 %v193_v51, %v137_v47  ;;  %v250_v53 = vmul.f32 %v193_v51, %v138_v48  ;;  %v188_v54 = vpop.permute.xlu0 %187 }
  0xa9   :  { %v247_v55 = vmul.f32 %v188_v54, %v135_v49  ;;  %v248_v56 = vmul.f32 %v188_v54, %v136_v50 }
  0xaa   :  { %282 = vst [vmem:[%s661_s2 + $0x70] sm:$0xff] %v249_v52  ;;  %283 = vst.msk [vmem:[%s661_s2 + $0x78] sm:$0xff] %vm268_vm0, %v250_v53 }
  0xab   :  { %280 = vst [vmem:[%s661_s2 + $0x60] sm:$0xff] %v247_v55  ;;  %281 = vst.msk [vmem:[%s661_s2 + $0x68] sm:$0xff] %vm268_vm0, %v248_v56  ;;  %v203_v61 = vpop.permute.xlu1 %202 }
  0xac   :  { %v253_v62 = vmul.f32 %v203_v61, %v141_v57  ;;  %v254_v63 = vmul.f32 %v203_v61, %v142_v58  ;;  %v198_v0 = vpop.permute.xlu0 %197 }
  0xad   :  { %v251_v1 = vmul.f32 %v198_v0, %v139_v59  ;;  %v252_v2 = vmul.f32 %v198_v0, %v140_v60 }
  0xae   :  { %286 = vst [vmem:[%s661_s2 + $0x90] sm:$0xff] %v253_v62  ;;  %287 = vst.msk [vmem:[%s661_s2 + $0x98] sm:$0xff] %vm268_vm0, %v254_v63 }
  0xaf   :  { %284 = vst [vmem:[%s661_s2 + $0x80] sm:$0xff] %v251_v1  ;;  %285 = vst.msk [vmem:[%s661_s2 + $0x88] sm:$0xff] %vm268_vm0, %v252_v2  ;;  %v213_v7 = vpop.permute.xlu1 %212 }
  0xb0   :  { %v257_v8 = vmul.f32 %v213_v7, %v145_v3  ;;  %v258_v9 = vmul.f32 %v213_v7, %v146_v4  ;;  %v208_v10 = vpop.permute.xlu0 %207 }
  0xb1   :  { %v255_v11 = vmul.f32 %v208_v10, %v143_v5  ;;  %v256_v12 = vmul.f32 %v208_v10, %v144_v6 }
  0xb2   :  { %290 = vst [vmem:[%s661_s2 + $0xb0] sm:$0xff] %v257_v8  ;;  %291 = vst.msk [vmem:[%s661_s2 + $0xb8] sm:$0xff] %vm268_vm0, %v258_v9 }
  0xb3   :  { %288 = vst [vmem:[%s661_s2 + $0xa0] sm:$0xff] %v255_v11  ;;  %289 = vst.msk [vmem:[%s661_s2 + $0xa8] sm:$0xff] %vm268_vm0, %v256_v12  ;;  %v223_v15 = vpop.permute.xlu1 %222 }
  0xb4   :  { %v261_v18 = vmul.f32 %v223_v15, %v149_v13  ;;  %v262_v19 = vmul.f32 %v223_v15, %v150_v14  ;;  %v218_v20 = vpop.permute.xlu0 %217 }
  0xb5   :  { %v259_v23 = vmul.f32 %v218_v20, %v147_v16  ;;  %v260_v24 = vmul.f32 %v218_v20, %v148_v17 }
  0xb6   :  { %294 = vst [vmem:[%s661_s2 + $0xd0] sm:$0xff] %v261_v18  ;;  %295 = vst.msk [vmem:[%s661_s2 + $0xd8] sm:$0xff] %vm268_vm0, %v262_v19 }
  0xb7   :  { %v233_v25 = vpop.permute.xlu1 %232  ;;  %292 = vst [vmem:[%s661_s2 + $0xc0] sm:$0xff] %v259_v23  ;;  %293 = vst.msk [vmem:[%s661_s2 + $0xc8] sm:$0xff] %vm268_vm0, %v260_v24 }
  0xb8   :  { %v265_v28 = vmul.f32 %v233_v25, %v153_v21  ;;  %v266_v29 = vmul.f32 %v233_v25, %v154_v22  ;;  %v228_v30 = vpop.permute.xlu0 %227 }
  0xb9   :  { %v263_v31 = vmul.f32 %v228_v30, %v151_v26  ;;  %v264_v32 = vmul.f32 %v228_v30, %v152_v27 }
  0xba   :  { %298 = vst [vmem:[%s661_s2 + $0xf0] sm:$0xff] %v265_v28  ;;  %299 = vst.msk [vmem:[%s661_s2 + $0xf8] sm:$0xff] %vm268_vm0, %v266_v29 }
  0xbb   :  { %296 = vst [vmem:[%s661_s2 + $0xe0] sm:$0xff] %v263_v31  ;;  %297 = vst.msk [vmem:[%s661_s2 + $0xe8] sm:$0xff] %vm268_vm0, %v264_v32 }

</bundles_post_ra>
